<compile_context>
chip_gen: v6e
topology: v6e:2x2x1
jax: 0.10.0
libtpu: 0.0.40
codegen_flags: <defaults>
</compile_context>

<pallas_src>
import functools

import jax
import jax.numpy as jnp
from jax.experimental import pallas as pl
from jax.experimental.pallas import tpu as pltpu


def _square_reg_loss_kernel(x_ref, o_ref, acc_ref, *, p, n_valid, hw_valid,
                            need_mask):
    j = pl.program_id(1)

    @pl.when(j == 0)
    def _():
        acc_ref[...] = jnp.zeros_like(acc_ref)

    x = x_ref[...].astype(jnp.float32)            # (tn, C, t_hw)
    s = jnp.sum(x * x, axis=1)                    # (tn, t_hw) channel reduction
    d = 1.0 - s
    if p == 1:
        loss = jnp.abs(d)
    else:
        loss = d ** p                             # p is a static int -> integer_pow

    if need_mask:
        tn, t_hw = loss.shape
        i = pl.program_id(0)
        rows = i * tn + jax.lax.broadcasted_iota(jnp.int32, (tn, t_hw), 0)
        cols = j * t_hw + jax.lax.broadcasted_iota(jnp.int32, (tn, t_hw), 1)
        loss = jnp.where((rows < n_valid) & (cols < hw_valid), loss, 0.0)

    acc_ref[...] += loss                          # VPU-only accumulate per step

    @pl.when(j == pl.num_programs(1) - 1)
    def _():
        partial = jnp.sum(acc_ref[...])           # one cross-lane reduce per row tile
        o_ref[...] = jnp.broadcast_to(partial, o_ref.shape)


def _choose_tiles(N, C, HW, itemsize):
    LANE = 128
    hw_pad = -(-HW // LANE) * LANE
    t_hw = min(hw_pad, 512)                       # >= 512 lanes when possible
    c_pad = -(-C // 8) * 8                        # sublane-padded VMEM footprint
    target_bytes = 4 * 1024 * 1024                # ~4 MiB/block; x2 for double buffering
    tn = max(1, target_bytes // (c_pad * t_hw * max(int(itemsize), 1)))
    tn = min(tn, N, 256)
    return tn, t_hw


def square_regularize_loss(x: jax.Array, p: int = 1) -> jax.Array:
    """x: (N, C, H, W) array (NCHW). Returns a scalar float32 loss."""
    N, C, H, W = x.shape
    HW = H * W
    x3 = x.reshape(N, C, HW)                      # glue reshape in plain JAX

    tn, t_hw = _choose_tiles(N, C, HW, x.dtype.itemsize)
    grid_n = pl.cdiv(N, tn)
    grid_hw = pl.cdiv(HW, t_hw)
    n_full = grid_n * tn
    hw_full = grid_hw * t_hw

    need_mask = (n_full != N) or (hw_full != HW)
    if need_mask:
        # zero-pad ragged edges; padded elements are masked out in-kernel.
        x3 = jnp.pad(x3, ((0, n_full - N), (0, 0), (0, hw_full - HW)))

    kernel = functools.partial(_square_reg_loss_kernel, p=p, n_valid=N,
                               hw_valid=HW, need_mask=need_mask)

    partials = pl.pallas_call(
        kernel,
        out_shape=jax.ShapeDtypeStruct((grid_n, 8, 128), jnp.float32),
        grid=(grid_n, grid_hw),
        in_specs=[pl.BlockSpec((tn, C, t_hw), lambda i, j: (i, 0, j))],
        out_specs=pl.BlockSpec((1, 8, 128), lambda i, j: (i, 0, 0)),
        scratch_shapes=[pltpu.VMEM((tn, t_hw), jnp.float32)],
        compiler_params=pltpu.CompilerParams(
            dimension_semantics=("parallel", "arbitrary")),
        cost_estimate=pl.CostEstimate(
            flops=2 * N * C * HW,
            transcendentals=0,
            bytes_accessed=x3.size * x3.dtype.itemsize + grid_n * 8 * 128 * 4),
    )(x3)

    # per-row-tile partial sums live at [:, 0, 0]; combine + divide once.
    return jnp.sum(partials[:, 0, 0]) / jnp.float32(N * HW)


if __name__ == "__main__":
    key = jax.random.PRNGKey(0)
    # Small shapes consistent with the forward: batch=2, channels=4, spatial=16x16
    x = jax.random.normal(key, (2, 4, 16, 16), dtype=jnp.float32)

    loss = square_regularize_loss(x, p=1)
    jax.block_until_ready(loss)
    ref = jnp.mean(jnp.abs(1.0 - jnp.sum(x * x, axis=1)))
    assert jnp.allclose(loss, ref, rtol=1e-5, atol=1e-5), (loss, ref)

    loss2 = square_regularize_loss(x, p=2)
    jax.block_until_ready(loss2)
    ref2 = jnp.mean((1.0 - jnp.sum(x * x, axis=1)) ** 2)
    assert jnp.allclose(loss2, ref2, rtol=1e-5, atol=1e-5), (loss2, ref2)

    print("KERNEL_OK")
</pallas_src>

<mosaic_0001>
module attributes {stable_mosaic.version = 11 : i64} {
  func.func @_square_reg_loss_kernel(%arg0: i32, %arg1: i32, %arg2: memref<2x4x256xf32, #tpu.memory_space<vmem>>, %arg3: memref<1x8x128xf32, #tpu.memory_space<vmem>>, %arg4: memref<2x256xf32, #tpu.memory_space<vmem>>) attributes {dimension_semantics = [#tpu.dimension_semantics<parallel>, #tpu.dimension_semantics<arbitrary>], iteration_bounds = array<i64: 1, 1>, scalar_prefetch = 0 : i64, scratch_operands = 1 : i64, tpu.core_type = #tpu.core_type<tc>, window_params = [{transform_indices = @transform_0, window_bounds = array<i64: 2, 4, 256>}, {transform_indices = @transform_1, window_bounds = array<i64: 1, 8, 128>}]} {
    %c0_i32 = arith.constant 0 : i32
    %0 = arith.cmpi eq, %arg1, %c0_i32 : i32
    %1 = arith.extui %0 : i1 to i32
    %c0_i32_0 = arith.constant 0 : i32
    %2 = arith.cmpi ne, %1, %c0_i32_0 : i32
    scf.if %2 {
      %cst_10 = arith.constant 0.000000e+00 : f32
      %15 = vector.broadcast %cst_10 : f32 to vector<2x256xf32>
      %c0_11 = arith.constant 0 : index
      %c0_12 = arith.constant 0 : index
      %16 = vector.load %arg4[%c0_11, %c0_12] : memref<2x256xf32, #tpu.memory_space<vmem>>, vector<2x256xf32>
      tpu.vector_store %arg4[%c0_11, %c0_12], %15 {strides = array<i32>} : memref<2x256xf32, #tpu.memory_space<vmem>>, vector<2x256xf32>,
    } else {
    }
    %c0 = arith.constant 0 : index
    %c0_1 = arith.constant 0 : index
    %c0_2 = arith.constant 0 : index
    %3 = vector.load %arg2[%c0, %c0_1, %c0_2] : memref<2x4x256xf32, #tpu.memory_space<vmem>>, vector<2x4x256xf32>
    %4 = arith.mulf %3, %3 : vector<2x4x256xf32>
    %cst = arith.constant dense<0.000000e+00> : vector<2x256xf32>
    %5 = vector.multi_reduction <add>, %4, %cst [1] : vector<2x4x256xf32> to vector<2x256xf32>
    %cst_3 = arith.constant 1.000000e+00 : f32
    %6 = vector.broadcast %cst_3 : f32 to vector<2x256xf32>
    %7 = arith.subf %6, %5 : vector<2x256xf32>
    %8 = math.absf %7 : vector<2x256xf32>
    %c0_4 = arith.constant 0 : index
    %c0_5 = arith.constant 0 : index
    %9 = vector.load %arg4[%c0_4, %c0_5] : memref<2x256xf32, #tpu.memory_space<vmem>>, vector<2x256xf32>
    %10 = arith.addf %9, %8 : vector<2x256xf32>
    %c0_6 = arith.constant 0 : index
    %c0_7 = arith.constant 0 : index
    %11 = vector.load %arg4[%c0_6, %c0_7] : memref<2x256xf32, #tpu.memory_space<vmem>>, vector<2x256xf32>
    tpu.vector_store %arg4[%c0_6, %c0_7], %10 {strides = array<i32>} : memref<2x256xf32, #tpu.memory_space<vmem>>, vector<2x256xf32>,
    %c0_i32_8 = arith.constant 0 : i32
    %12 = arith.cmpi eq, %arg1, %c0_i32_8 : i32
    %13 = arith.extui %12 : i1 to i32
    %c0_i32_9 = arith.constant 0 : i32
    %14 = arith.cmpi ne, %13, %c0_i32_9 : i32
    scf.if %14 {
      %c0_10 = arith.constant 0 : index
      %c0_11 = arith.constant 0 : index
      %15 = vector.load %arg4[%c0_10, %c0_11] : memref<2x256xf32, #tpu.memory_space<vmem>>, vector<2x256xf32>
      %16 = vector.shape_cast %15 : vector<2x256xf32> to vector<1x2x256xf32>
      %cst_12 = arith.constant dense<0.000000e+00> : vector<1xf32>
      %17 = vector.multi_reduction <add>, %16, %cst_12 [1, 2] : vector<1x2x256xf32> to vector<1xf32>
      %18 = vector.shape_cast %17 : vector<1xf32> to vector<1x1x1xf32>
      %19 = vector.extract %18[0, 0, 0] : f32 from vector<1x1x1xf32>
      %20 = vector.broadcast %19 : f32 to vector<1x8x128xf32>
      %c0_13 = arith.constant 0 : index
      %c0_14 = arith.constant 0 : index
      %c0_15 = arith.constant 0 : index
      %21 = vector.load %arg3[%c0_13, %c0_14, %c0_15] : memref<1x8x128xf32, #tpu.memory_space<vmem>>, vector<1x8x128xf32>
      tpu.vector_store %arg3[%c0_13, %c0_14, %c0_15], %20 {strides = array<i32>} : memref<1x8x128xf32, #tpu.memory_space<vmem>>, vector<1x8x128xf32>,
    } else {
    }
    return
  }
  func.func @transform_0(%arg0: i32, %arg1: i32) -> (i32, i32, i32) {
    %c0_i32 = arith.constant 0 : i32
    %c0_i32_0 = arith.constant 0 : i32
    return %arg0, %c0_i32, %arg1 : i32, i32, i32
  }
  func.func @transform_1(%arg0: i32, %arg1: i32) -> (i32, i32, i32) {
    %c0_i32 = arith.constant 0 : i32
    %c0_i32_0 = arith.constant 0 : i32
    %c0_i32_1 = arith.constant 0 : i32
    return %arg0, %c0_i32, %c0_i32_0 : i32, i32, i32
  }
}

</mosaic_0001>

<bundles_post_ra>
// kernel: tpu_custom_call.1
= control target key start
LH: loop header
LB: loop body
LE: loop exit
PB: predicated region body
PF: predicated region fallthrough
CT: control target
= control target key end

     0   :  { %6 = vsyncpa [#allocation4], 0  ;;  %s232_s0 = inlined_call_operand.hbm [shape: f32[2,4,256], index: 0, kind: input, shape index: {}]   ;;  %s233_s1 = inlined_call_operand.hbm [shape: f32[1,8,128], index: 1, kind: output, shape index: {}]  }
   0x1   :  { %7 = vsyncpa [#allocation5], 0  ;;  %s210_s6 = smov [#allocation3]  }
   0x2   :  { %s13_s7 = sshll.u32 %s210_s6, 4  ;;  %s14_s7 = int_to_ptr.vmem [resolvable:$true] %s13_s7 }
   0x3   :  { %s174_s8 = scalar_lea.vmem %s14_s7, 256  ;;  %p179_p1 = scmp.lt.s32.totalorder %s14_s7, %s14_s7 }
   0x4   :  { %p175_p0 = scmp.ne.s32.totalorder %s14_s7, %s174_s8  ;;  %p180_p2 = scmp.lt.s32.totalorder %s174_s8, %s174_s8 }
   0x6   :  { %p181_p3 = por %p180_p2, %p179_p1 }
   0x8   :  { %p182_p4 = pnand %p181_p3, %p175_p0 }
   0xa   :  { %185 = shalt.err (!%p182_p4)
}
   0xb   :  { %s211_s9 = smov 128   ;;  %s212_s10 = smov 8  }
   0xc   :  { %19 = dma.hbm_to_vmem [thread:$0]  %s232_s0, 256, %s14_s7, [#allocation4], %s211_s9, %s211_s9, %s212_s10  }
   0xd   :  { %206 = dma.done.wait [#allocation4], 256  }
   0xe   :  { %207 = vsyncadd [#allocation4], 4294967040  ;;  %v213_v0 = vmov 0.0   ;;  %v28_v1 = vld [vmem:[#allocation3] sm:$0xff]  ;;  %v29_v2 = vld [vmem:[#allocation3 + $0x8] sm:$0xff]  ;;  %vm38_vm0 = vcmask 1043456   ;;  %v84_v27 = vlaneseq }
   0xf   :  { %27 = vst [vmem:[#allocation2] sm:$0xf] %v213_v0  ;;  %v30_v3 = vmul.f32 %v28_v1, %v28_v1  ;;  %v31_v4 = vmul.f32 %v29_v2, %v29_v2  ;;  %v214_v25 = vmov 1983009808   ;;  %vm101_vm1 = vcmask 1041409   ;;  %s215_s0 = smov [#allocation6]  }
  0x10   :  { %v82_v26 = vunpack.c.l.s4 %v214_v25  ;;  %v85_v37 = vshrl.u32 %v84_v27, 7  ;;  %vm103_vm2 = vcmask 1043459   ;;  %vm105_vm3 = vcmask 1045509   ;;  %s148_s13 = sshll.u32 %s215_s0, 4  ;;  %s149_s13 = int_to_ptr.vmem [resolvable:$true] %s148_s13 }
  0x11   :  { %v34_v5 = vcombine.high %v30_v3, %v30_v3  ;;  %v35_v6 = vcombine.high %v31_v4, %v31_v4  ;;  %v39_v7 = vsel %vm38_vm0, %v30_v3, 0.0  ;;  %v53_v8 = vsel %vm38_vm0, %v31_v4, 0.0  ;;  %s186_s15 = scalar_lea.vmem %s149_s13, 128  ;;  %p191_p6 = scmp.lt.s32.totalorder %s149_s13, %s149_s13 }
  0x12   :  { %v40_v9 = vrot.slane %v39_v7, 4  ;;  %v54_v10 = vrot.slane %v53_v8, 4  ;;  %v83_v36 = vunpack.c.0.s8 %v82_v26  ;;  %vm107_vm4 = vcmask 1047559   ;;  %p187_p5 = scmp.ne.s32.totalorder %s149_s13, %s186_s15  ;;  %p192_p7 = scmp.lt.s32.totalorder %s186_s15, %s186_s15 }
  0x13   :  { %v46_v11 = vsel %vm38_vm0, %v34_v5, 0.0  ;;  %v60_v12 = vsel %vm38_vm0, %v35_v6, 0.0  ;;  %vm127_vm5 = vcmask 1041408  }
  0x14   :  { %v41_v13 = vadd.f32 %v40_v9, %v39_v7  ;;  %v47_v14 = vrot.slane %v46_v11, 4  ;;  %v55_v15 = vadd.f32 %v54_v10, %v53_v8  ;;  %v61_v16 = vrot.slane %v60_v12, 4  ;;  %p193_p8 = por %p192_p7, %p191_p6 }
  0x15   :  { %v86_v48 = vsub.s32 %v83_v36, %v85_v37 }
  0x16   :  { %v42_v17 = vrot.slane %v41_v13, 2  ;;  %v48_v18 = vadd.f32 %v47_v14, %v46_v11  ;;  %v56_v19 = vrot.slane %v55_v15, 2  ;;  %v62_v20 = vadd.f32 %v61_v16, %v60_v12  ;;  %v75_v55 = vld [vmem:[#allocation2] sm:$0xf]  ;;  %p194_p9 = pnand %p193_p8, %p187_p5 }
  0x18   :  { %v43_v21 = vadd.f32 %v42_v17, %v41_v13  ;;  %v49_v22 = vrot.slane %v48_v18, 2  ;;  %v57_v23 = vadd.f32 %v56_v19, %v55_v15  ;;  %v63_v24 = vrot.slane %v62_v20, 2 }
  0x1a   :  { %v44_v28 = vrot.slane %v43_v21, 1  ;;  %v50_v29 = vadd.f32 %v49_v22, %v48_v18  ;;  %v58_v30 = vrot.slane %v57_v23, 1  ;;  %v64_v31 = vadd.f32 %v63_v24, %v62_v20 }
  0x1c   :  { %v45_v32 = vadd.f32 %v44_v28, %v43_v21  ;;  %v51_v33 = vrot.slane %v50_v29, 1  ;;  %v59_v34 = vadd.f32 %v58_v30, %v57_v23  ;;  %v65_v35 = vrot.slane %v64_v31, 1 }
  0x1e   :  { %v52_v38 = vadd.f32 %v51_v33, %v50_v29  ;;  %v66_v39 = vadd.f32 %v65_v35, %v64_v31  ;;  %v67_v40 = vsub.f32 1.0, %v45_v32  ;;  %v69_v41 = vsub.f32 1.0, %v59_v34 }
  0x20   :  { %v68_v42 = vsub.f32 1.0, %v52_v38  ;;  %v70_v43 = vsub.f32 1.0, %v66_v39  ;;  %v71_v44 = vand.u32 2147483647, %v67_v40  ;;  %v73_v45 = vand.u32 2147483647, %v69_v41 }
  0x22   :  { %v72_v46 = vand.u32 2147483647, %v68_v42  ;;  %v74_v47 = vand.u32 2147483647, %v70_v43 }
  0x24   :  { %v80_v49 = vcombine.low %v71_v44, %v72_v46  ;;  %v88_v50 = vcombine.low %v73_v45, %v74_v47 }
  0x26   :  { %v87_v51 = vrot.slane %v80_v49, %v86_v48  ;;  %v95_v52 = vrot.slane %v88_v50, %v86_v48 }
  0x28   :  { %v100_v53 = vrot.slane %v95_v52, 7 }
  0x2a   :  { %v102_v54 = vsel %vm101_vm1, %v100_v53, %v87_v51 }
  0x2b   :  { %v104_v56 = vsel %vm103_vm2, %v100_v53, %v102_v54 }
  0x2c   :  { %v106_v57 = vsel %vm105_vm3, %v100_v53, %v104_v56 }
  0x2d   :  { %v108_v58 = vsel %vm107_vm4, %v100_v53, %v106_v57 }
  0x2e   :  { %v110_v59 = vadd.f32 %v108_v58, %v75_v55 }
  0x30   :  { %111 = vst [vmem:[#allocation2] sm:$0xf] %v110_v59 }
  0x37   :  { %v157_v60 = vld.sshfl [vmem:[#allocation2] sm:$0x33 pattern:$0x76325410] }
  0x38   :  { %v124_v61 = vcombine.high %v157_v60, %v157_v60  ;;  %v128_v62 = vsel %vm127_vm5, %v157_v60, 0.0 }
  0x3a   :  { %v129_v63 = vsel %vm127_vm5, %v124_v61, 0.0 }
  0x3b   :  { %v130_v0 = vadd.f32 %v129_v63, %v128_v62 }
  0x3d   :  { %131 = vadd.xlane.f32.xlu0 %v130_v0 }
  0xc6   :  { %v132_v1 = vpop.xlane.xlu0 %131 }
  0xc7   :  { %v133_v2 = vrot.slane %v132_v1, 4 }
  0xc9   :  { %v134_v3 = vadd.f32 %v133_v2, %v132_v1 }
  0xcb   :  { %v135_v4 = vrot.slane %v134_v3, 2 }
  0xcd   :  { %v136_v5 = vadd.f32 %v135_v4, %v134_v3 }
  0xcf   :  { %v137_v6 = vrot.slane %v136_v5, 1 }
  0xd1   :  { %v138_v7 = vadd.f32 %v137_v6, %v136_v5 }
  0xd3   :  { %158 = vpush %v138_v7 }
 0x104   :  { %s159_s14 = spop %158 }
 0x105   :  { %v140_v8 = vstv %s159_s14 }
 0x106   :  { %141 = vst [vmem:[#allocation6] sm:$0xff] %v140_v8 }
 0x107   :  { %197 = shalt.err (!%p194_p9)
}
 0x108   :  { %151 = dma.vmem_to_hbm [thread:$0]  %s149_s13, 128, %s233_s1, [#allocation5]  }
 0x109   :  { %208 = dma.done.wait [#allocation5], 128  }
 0x10a   :  { %209 = vsyncadd [#allocation5], 4294967168 }
 0x10b   :  { %155 = vsyncpa [#allocation4], 1 }
 0x10c   :  { %156 = vsyncpa [#allocation5], 1 }

</bundles_post_ra>
